<compile_context>
chip_gen: v7x
topology: tpu7x:2x2x1
jax: 0.10.0
libtpu: 0.0.40
codegen_flags: <defaults>
</compile_context>

<pallas_src>
import math

import jax
import jax.numpy as jnp
from jax import lax
from jax.experimental import pallas as pl
from jax.experimental.pallas import tpu as pltpu


# ----------------------------- Fused Pallas kernel -------------------------- #

def _make_kernel(num_heads, bias, return_attn):
    """Fused cross-attention kernel; one (batch, query-tile) block per grid step."""
    H = num_heads

    def kernel(x_ref, y_ref, qw_ref, kw_ref, vw_ref, pw_ref, pb_ref, out_ref, *attn_out):
        TN = x_ref.shape[1]
        C = x_ref.shape[2]
        cdt = x_ref.dtype                       # MXU operand dtype (f32 or bf16)

        x = x_ref[0]                            # (TN, C)
        y = y_ref[0]                            # (Ny, E)

        # Single f32 accumulator for the merged-head output projection.
        out_acc = jnp.zeros((TN, C), jnp.float32)

        # H is small & static -> fully unrolled; per-head weights mean every
        # operand below is a standalone tile (no lane slicing, no concats).
        for h in range(H):
            qh = jnp.dot(x, qw_ref[h], preferred_element_type=jnp.float32)   # (TN, Dh)
            kh = jnp.dot(y, kw_ref[h], preferred_element_type=jnp.float32)   # (Ny, Dh)
            vh = jnp.dot(y, vw_ref[h], preferred_element_type=jnp.float32)   # (Ny, Dh)

            # 'nd,sd->ns': contract Dh vs Dh; no transposed k materialized.
            s = lax.dot_general(qh.astype(cdt), kh.astype(cdt),
                                (((1,), (1,)), ((), ())),
                                preferred_element_type=jnp.float32)          # (TN, Ny)
            a = jax.nn.sigmoid(s + bias)                                     # f32 epilogue
            if return_attn:
                attn_out[0][0, h] = a.astype(attn_out[0].dtype)              # (TN, Ny) slab

            oh = jnp.dot(a.astype(cdt), vh.astype(cdt),
                         preferred_element_type=jnp.float32)                 # (TN, Dh)
            out_acc = out_acc + jnp.dot(oh.astype(cdt), pw_ref[h],
                                        preferred_element_type=jnp.float32)  # (TN, C)

        out = out_acc + pb_ref[...]             # f32 bias add, (1,C) broadcast
        out_ref[0] = out.astype(out_ref.dtype)

    return kernel


# --------------------------------- Wrapper ----------------------------------- #

def cross_attention_forward(params, x, y, num_heads, *, return_attn=True,
                            compute_dtype=None, tile_n=None):
    """Fused CrossAttention forward. Returns (out, attn) like the PyTorch module."""
    B, N, C = x.shape
    By, Ny, E = y.shape
    assert By == B
    H = num_heads
    Dh = C // H
    assert H * Dh == C, "decoder_dim must be divisible by num_heads"

    out_dtype = x.dtype
    cdt = jnp.dtype(compute_dtype) if compute_dtype is not None else jnp.dtype(x.dtype)

    scale = 1.0 / math.sqrt(Dh)          # default SDPA scaling (qk_scale=None)
    bias = float(-math.log(Ny))          # attn_bias += -log(S), S == Ny

    # ---- host-side weight prep (tiny XLA ops, outside the kernel) ----------
    # Fold 1/sqrt(Dh) into Wq. NOTE: not bit-exact vs. scaling the scores after
    # the matmul, but well within 1e-4 of the reference.
    qw = params["q_w"] * jnp.asarray(scale, params["q_w"].dtype)             # (C, C)
    qw = qw.reshape(C, H, Dh).transpose(1, 0, 2).astype(cdt)                 # (H, C, Dh)
    kvw = params["kv_w"]                                                     # (E, 2C)
    kw = kvw[:, :C].reshape(E, H, Dh).transpose(1, 0, 2).astype(cdt)         # (H, E, Dh)
    vw = kvw[:, C:].reshape(E, H, Dh).transpose(1, 0, 2).astype(cdt)         # (H, E, Dh)
    pw = params["proj_w"].reshape(H, Dh, C).astype(cdt)                      # (H, Dh, C)
    pb = params["proj_b"].reshape(1, C).astype(jnp.float32)                  # f32 epilogue

    xc = x.astype(cdt)
    yc = y.astype(cdt)

    # ---- query-length tiling -------------------------------------------------
    if tile_n is None:
        tile_n = N if N <= 512 else 512
    tile_n = min(int(tile_n), N)
    if tile_n != N and tile_n % 8 != 0:          # (8,128) sublane rule
        tile_n = max(8, (tile_n // 8) * 8)
    n_tiles = pl.cdiv(N, tile_n)

    kernel = _make_kernel(H, bias, return_attn)

    in_specs = [
        pl.BlockSpec((1, tile_n, C), lambda b, n: (b, n, 0)),   # x: (batch, q-tile)
        pl.BlockSpec((1, Ny, E), lambda b, n: (b, 0, 0)),       # y: same block across n -> no re-DMA
        pl.BlockSpec((H, C, Dh), lambda b, n: (0, 0, 0)),       # Wq  (pre-scaled, per-head), resident
        pl.BlockSpec((H, E, Dh), lambda b, n: (0, 0, 0)),       # Wk, resident
        pl.BlockSpec((H, E, Dh), lambda b, n: (0, 0, 0)),       # Wv, resident
        pl.BlockSpec((H, Dh, C), lambda b, n: (0, 0, 0)),       # Wproj (per-head rows), resident
        pl.BlockSpec((1, C), lambda b, n: (0, 0)),              # proj bias (f32), resident
    ]
    out_shape = [jax.ShapeDtypeStruct((B, N, C), out_dtype)]
    out_specs = [pl.BlockSpec((1, tile_n, C), lambda b, n: (b, n, 0))]
    if return_attn:
        # Final layout emitted directly from the kernel: (B, H, N, Ny), Ny lane-dense.
        out_shape.append(jax.ShapeDtypeStruct((B, H, N, Ny), jnp.float32))
        out_specs.append(pl.BlockSpec((1, H, tile_n, Ny), lambda b, n: (b, 0, n, 0)))

    # ---- cost estimate + VMEM budget ----------------------------------------
    itemsize = jnp.dtype(cdt).itemsize
    flops = (2 * B * N * C * C              # q proj
             + 2 * B * Ny * E * 2 * C       # k,v proj
             + 2 * B * N * Ny * C           # q @ k^T   (all heads)
             + 2 * B * N * Ny * C           # attn @ v  (all heads)
             + 2 * B * N * C * C)           # out proj
    bytes_accessed = (B * N * C * itemsize + B * Ny * E * itemsize
                      + (H * C * Dh + 2 * H * E * Dh + H * Dh * C) * itemsize + C * 4
                      + B * N * C * jnp.dtype(out_dtype).itemsize
                      + (B * H * N * Ny * 4 if return_attn else 0))
    cost = pl.CostEstimate(flops=int(flops),
                           transcendentals=int(B * H * N * Ny),
                           bytes_accessed=int(bytes_accessed))

    weight_bytes = (H * C * Dh + 2 * H * E * Dh + H * Dh * C) * itemsize + C * 4
    tile_bytes = ((tile_n * C + Ny * E) * itemsize
                  + tile_n * C * jnp.dtype(out_dtype).itemsize
                  + (H * tile_n * Ny * 4 if return_attn else 0))
    scratch_bytes = (tile_n * C + tile_n * Ny + 3 * Ny * Dh + 2 * tile_n * Dh) * 4
    budget = 2 * (weight_bytes + tile_bytes) + 4 * scratch_bytes      # 2x: double buffers
    vmem_limit = int(min(max(2 * budget, 32 * 1024 * 1024), 64 * 1024 * 1024))

    results = pl.pallas_call(
        kernel,
        out_shape=tuple(out_shape),
        grid=(B, n_tiles),
        in_specs=in_specs,
        out_specs=tuple(out_specs),
        compiler_params=pltpu.CompilerParams(
            dimension_semantics=("parallel", "parallel"),
            vmem_limit_bytes=vmem_limit),
        cost_estimate=cost,
    )(xc, yc, qw, kw, vw, pw, pb)

    out = results[0]
    attn = results[1] if return_attn else None
    return out, attn


# ------------------------------ Params & reference -------------------------- #

def init_params(key, encoder_dim, decoder_dim):
    """Deterministic PyTorch-style (uniform +-1/sqrt(fan_in)) init, (in, out) layout."""
    k1, k2, k3, k4 = jax.random.split(key, 4)

    def unif(k, shape, fan_in):
        bound = 1.0 / math.sqrt(fan_in)
        return jax.random.uniform(k, shape, jnp.float32, -bound, bound)

    return {
        "q_w": unif(k1, (decoder_dim, decoder_dim), decoder_dim),
        "kv_w": unif(k2, (encoder_dim, 2 * decoder_dim), encoder_dim),
        "proj_w": unif(k3, (decoder_dim, decoder_dim), decoder_dim),
        "proj_b": unif(k4, (decoder_dim,), decoder_dim),
    }


def reference_forward(params, x, y, num_heads):
    """Pure-JAX f32 reference mirroring the PyTorch forward, for verification."""
    B, N, C = x.shape
    _, Ny, E = y.shape
    H = num_heads
    Dh = C // H
    q = x @ params["q_w"]
    kv = y @ params["kv_w"]
    k, v = kv[..., :C], kv[..., C:]
    qh = q.reshape(B, N, H, Dh).transpose(0, 2, 1, 3)
    kh = k.reshape(B, Ny, H, Dh).transpose(0, 2, 1, 3)
    vh = v.reshape(B, Ny, H, Dh).transpose(0, 2, 1, 3)
    s = jnp.einsum("bhnd,bhsd->bhns", qh, kh) / math.sqrt(Dh) - math.log(Ny)
    attn = jax.nn.sigmoid(s)
    o = jnp.einsum("bhns,bhsd->bhnd", attn, vh)
    o = o.transpose(0, 2, 1, 3).reshape(B, N, C)
    out = o @ params["proj_w"] + params["proj_b"]
    return out, attn


if __name__ == "__main__":
    B, N, Ny = 2, 8, 16
    encoder_dim, decoder_dim, num_heads = 16, 32, 4

    key = jax.random.PRNGKey(0)
    kp, kx, ky = jax.random.split(key, 3)
    params = init_params(kp, encoder_dim, decoder_dim)
    x = jax.random.normal(kx, (B, N, decoder_dim), jnp.float32)
    y = jax.random.normal(ky, (B, Ny, encoder_dim), jnp.float32)

    ref_out, ref_attn = reference_forward(params, x, y, num_heads)

    # f32 operands: tight check against the f32 reference.
    out, attn = cross_attention_forward(params, x, y, num_heads)
    out = jax.block_until_ready(out)
    attn = jax.block_until_ready(attn)
    assert out.shape == (B, N, decoder_dim)
    assert attn.shape == (B, num_heads, N, Ny)
    assert jnp.allclose(out, ref_out, atol=1e-4, rtol=1e-4)
    assert jnp.allclose(attn, ref_attn, atol=1e-4, rtol=1e-4)

    # bf16 MXU operands with f32 accumulation (the v5e/v6e/v7x fast path).
    out_bf, attn_bf = cross_attention_forward(params, x, y, num_heads,
                                              compute_dtype=jnp.bfloat16)
    out_bf = jax.block_until_ready(out_bf)
    assert jnp.allclose(out_bf.astype(jnp.float32), ref_out, atol=1e-1, rtol=1e-1)
    assert jnp.allclose(attn_bf, ref_attn, atol=5e-2, rtol=5e-2)

    # attn-skipping path (no HBM write of the attention map).
    out_na, attn_na = cross_attention_forward(params, x, y, num_heads,
                                              return_attn=False)
    out_na = jax.block_until_ready(out_na)
    assert attn_na is None
    assert jnp.allclose(out_na, ref_out, atol=1e-4, rtol=1e-4)

    print("KERNEL_OK")
</pallas_src>

<mosaic_0001>
module attributes {stable_mosaic.version = 11 : i64} {
  func.func @kernel(%arg0: i32, %arg1: i32, %arg2: memref<1x8x32xf32, #tpu.memory_space<vmem>>, %arg3: memref<1x16x16xf32, #tpu.memory_space<vmem>>, %arg4: memref<4x32x8xf32, #tpu.memory_space<vmem>>, %arg5: memref<4x16x8xf32, #tpu.memory_space<vmem>>, %arg6: memref<4x16x8xf32, #tpu.memory_space<vmem>>, %arg7: memref<4x8x32xf32, #tpu.memory_space<vmem>>, %arg8: memref<1x32xf32, #tpu.memory_space<vmem>>, %arg9: memref<1x8x32xf32, #tpu.memory_space<vmem>>, %arg10: memref<1x4x8x16xf32, #tpu.memory_space<vmem>>) attributes {dimension_semantics = [#tpu.dimension_semantics<parallel>, #tpu.dimension_semantics<parallel>], iteration_bounds = array<i64: 2, 1>, scalar_prefetch = 0 : i64, scratch_operands = 0 : i64, tpu.core_type = #tpu.core_type<tc>, window_params = [{transform_indices = @transform_0, window_bounds = array<i64: 1, 8, 32>}, {transform_indices = @transform_1, window_bounds = array<i64: 1, 16, 16>}, {pipeline_mode = #tpu.pipeline_mode<synchronous>, transform_indices = @transform_2, window_bounds = array<i64: 4, 32, 8>}, {pipeline_mode = #tpu.pipeline_mode<synchronous>, transform_indices = @transform_3, window_bounds = array<i64: 4, 16, 8>}, {pipeline_mode = #tpu.pipeline_mode<synchronous>, transform_indices = @transform_4, window_bounds = array<i64: 4, 16, 8>}, {pipeline_mode = #tpu.pipeline_mode<synchronous>, transform_indices = @transform_5, window_bounds = array<i64: 4, 8, 32>}, {pipeline_mode = #tpu.pipeline_mode<synchronous>, transform_indices = @transform_6, window_bounds = array<i64: 1, 32>}, {transform_indices = @transform_7, window_bounds = array<i64: 1, 8, 32>}, {transform_indices = @transform_8, window_bounds = array<i64: 1, 4, 8, 16>}]} {
    %c0 = arith.constant 0 : index
    %c0_0 = arith.constant 0 : index
    %c0_1 = arith.constant 0 : index
    %0 = vector.load %arg2[%c0, %c0_0, %c0_1] : memref<1x8x32xf32, #tpu.memory_space<vmem>>, vector<1x8x32xf32>
    %1 = vector.shape_cast %0 : vector<1x8x32xf32> to vector<8x32xf32>
    %c0_2 = arith.constant 0 : index
    %c0_3 = arith.constant 0 : index
    %c0_4 = arith.constant 0 : index
    %2 = vector.load %arg3[%c0_2, %c0_3, %c0_4] : memref<1x16x16xf32, #tpu.memory_space<vmem>>, vector<1x16x16xf32>
    %3 = vector.shape_cast %2 : vector<1x16x16xf32> to vector<16x16xf32>
    %cst = arith.constant 0.000000e+00 : f32
    %4 = vector.broadcast %cst : f32 to vector<8x32xf32>
    %c0_5 = arith.constant 0 : index
    %c0_6 = arith.constant 0 : index
    %c0_7 = arith.constant 0 : index
    %5 = vector.load %arg4[%c0_5, %c0_6, %c0_7] : memref<4x32x8xf32, #tpu.memory_space<vmem>>, vector<1x32x8xf32>
    %6 = vector.shape_cast %5 : vector<1x32x8xf32> to vector<32x8xf32>
    %cst_8 = arith.constant dense<0.000000e+00> : vector<8x8xf32>
    %7 = tpu.matmul %1, %6, %cst_8 {dimension_numbers = #tpu.dot_dimension_numbers<[1], [0], [0], [1], [0, 0, 1, 1], [], []>} : vector<8x32xf32>, vector<32x8xf32>, vector<8x8xf32> -> vector<8x8xf32>
    %c0_9 = arith.constant 0 : index
    %c0_10 = arith.constant 0 : index
    %c0_11 = arith.constant 0 : index
    %8 = vector.load %arg5[%c0_9, %c0_10, %c0_11] : memref<4x16x8xf32, #tpu.memory_space<vmem>>, vector<1x16x8xf32>
    %9 = vector.shape_cast %8 : vector<1x16x8xf32> to vector<16x8xf32>
    %cst_12 = arith.constant dense<0.000000e+00> : vector<16x8xf32>
    %10 = tpu.matmul %3, %9, %cst_12 {dimension_numbers = #tpu.dot_dimension_numbers<[1], [0], [0], [1], [0, 0, 1, 1], [], []>} : vector<16x16xf32>, vector<16x8xf32>, vector<16x8xf32> -> vector<16x8xf32>
    %c0_13 = arith.constant 0 : index
    %c0_14 = arith.constant 0 : index
    %c0_15 = arith.constant 0 : index
    %11 = vector.load %arg6[%c0_13, %c0_14, %c0_15] : memref<4x16x8xf32, #tpu.memory_space<vmem>>, vector<1x16x8xf32>
    %12 = vector.shape_cast %11 : vector<1x16x8xf32> to vector<16x8xf32>
    %cst_16 = arith.constant dense<0.000000e+00> : vector<16x8xf32>
    %13 = tpu.matmul %3, %12, %cst_16 {dimension_numbers = #tpu.dot_dimension_numbers<[1], [0], [0], [1], [0, 0, 1, 1], [], []>} : vector<16x16xf32>, vector<16x8xf32>, vector<16x8xf32> -> vector<16x8xf32>
    %cst_17 = arith.constant dense<0.000000e+00> : vector<8x16xf32>
    %14 = tpu.matmul %7, %10, %cst_17 {dimension_numbers = #tpu.dot_dimension_numbers<[1], [1], [0], [0], [0, 0, 1, 0], [], []>} : vector<8x8xf32>, vector<16x8xf32>, vector<8x16xf32> -> vector<8x16xf32>
    %cst_18 = arith.constant -2.77258873 : f32
    %15 = vector.broadcast %cst_18 : f32 to vector<8x16xf32>
    %16 = arith.addf %14, %15 : vector<8x16xf32>
    %17 = arith.negf %16 : vector<8x16xf32>
    %18 = math.exp %17 : vector<8x16xf32>
    %cst_19 = arith.constant 1.000000e+00 : f32
    %19 = vector.broadcast %cst_19 : f32 to vector<8x16xf32>
    %20 = arith.addf %19, %18 : vector<8x16xf32>
    %21 = arith.divf %19, %20 : vector<8x16xf32>
    %c0_20 = arith.constant 0 : index
    %c0_21 = arith.constant 0 : index
    %c0_22 = arith.constant 0 : index
    %c0_23 = arith.constant 0 : index
    %22 = vector.load %arg10[%c0_20, %c0_21, %c0_22, %c0_23] : memref<1x4x8x16xf32, #tpu.memory_space<vmem>>, vector<1x1x8x16xf32>
    %23 = vector.shape_cast %22 : vector<1x1x8x16xf32> to vector<8x16xf32>
    %24 = vector.shape_cast %21 : vector<8x16xf32> to vector<1x1x8x16xf32>
    tpu.vector_store %arg10[%c0_20, %c0_21, %c0_22, %c0_23], %24 {strides = array<i32>} : memref<1x4x8x16xf32, #tpu.memory_space<vmem>>, vector<1x1x8x16xf32>,
    %cst_24 = arith.constant dense<0.000000e+00> : vector<8x8xf32>
    %25 = tpu.matmul %21, %13, %cst_24 {dimension_numbers = #tpu.dot_dimension_numbers<[1], [0], [0], [1], [0, 0, 1, 1], [], []>} : vector<8x16xf32>, vector<16x8xf32>, vector<8x8xf32> -> vector<8x8xf32>
    %c0_25 = arith.constant 0 : index
    %c0_26 = arith.constant 0 : index
    %c0_27 = arith.constant 0 : index
    %26 = vector.load %arg7[%c0_25, %c0_26, %c0_27] : memref<4x8x32xf32, #tpu.memory_space<vmem>>, vector<1x8x32xf32>
    %27 = vector.shape_cast %26 : vector<1x8x32xf32> to vector<8x32xf32>
    %cst_28 = arith.constant dense<0.000000e+00> : vector<8x32xf32>
    %28 = tpu.matmul %25, %27, %cst_28 {dimension_numbers = #tpu.dot_dimension_numbers<[1], [0], [0], [1], [0, 0, 1, 1], [], []>} : vector<8x8xf32>, vector<8x32xf32>, vector<8x32xf32> -> vector<8x32xf32>
    %29 = arith.addf %4, %28 : vector<8x32xf32>
    %c1 = arith.constant 1 : index
    %c0_29 = arith.constant 0 : index
    %c0_30 = arith.constant 0 : index
    %30 = vector.load %arg4[%c1, %c0_29, %c0_30] : memref<4x32x8xf32, #tpu.memory_space<vmem>>, vector<1x32x8xf32>
    %31 = vector.shape_cast %30 : vector<1x32x8xf32> to vector<32x8xf32>
    %cst_31 = arith.constant dense<0.000000e+00> : vector<8x8xf32>
    %32 = tpu.matmul %1, %31, %cst_31 {dimension_numbers = #tpu.dot_dimension_numbers<[1], [0], [0], [1], [0, 0, 1, 1], [], []>} : vector<8x32xf32>, vector<32x8xf32>, vector<8x8xf32> -> vector<8x8xf32>
    %c1_32 = arith.constant 1 : index
    %c0_33 = arith.constant 0 : index
    %c0_34 = arith.constant 0 : index
    %33 = vector.load %arg5[%c1_32, %c0_33, %c0_34] : memref<4x16x8xf32, #tpu.memory_space<vmem>>, vector<1x16x8xf32>
    %34 = vector.shape_cast %33 : vector<1x16x8xf32> to vector<16x8xf32>
    %cst_35 = arith.constant dense<0.000000e+00> : vector<16x8xf32>
    %35 = tpu.matmul %3, %34, %cst_35 {dimension_numbers = #tpu.dot_dimension_numbers<[1], [0], [0], [1], [0, 0, 1, 1], [], []>} : vector<16x16xf32>, vector<16x8xf32>, vector<16x8xf32> -> vector<16x8xf32>
    %c1_36 = arith.constant 1 : index
    %c0_37 = arith.constant 0 : index
    %c0_38 = arith.constant 0 : index
    %36 = vector.load %arg6[%c1_36, %c0_37, %c0_38] : memref<4x16x8xf32, #tpu.memory_space<vmem>>, vector<1x16x8xf32>
    %37 = vector.shape_cast %36 : vector<1x16x8xf32> to vector<16x8xf32>
    %cst_39 = arith.constant dense<0.000000e+00> : vector<16x8xf32>
    %38 = tpu.matmul %3, %37, %cst_39 {dimension_numbers = #tpu.dot_dimension_numbers<[1], [0], [0], [1], [0, 0, 1, 1], [], []>} : vector<16x16xf32>, vector<16x8xf32>, vector<16x8xf32> -> vector<16x8xf32>
    %cst_40 = arith.constant dense<0.000000e+00> : vector<8x16xf32>
    %39 = tpu.matmul %32, %35, %cst_40 {dimension_numbers = #tpu.dot_dimension_numbers<[1], [1], [0], [0], [0, 0, 1, 0], [], []>} : vector<8x8xf32>, vector<16x8xf32>, vector<8x16xf32> -> vector<8x16xf32>
    %cst_41 = arith.constant -2.77258873 : f32
    %40 = vector.broadcast %cst_41 : f32 to vector<8x16xf32>
    %41 = arith.addf %39, %40 : vector<8x16xf32>
    %42 = arith.negf %41 : vector<8x16xf32>
    %43 = math.exp %42 : vector<8x16xf32>
    %cst_42 = arith.constant 1.000000e+00 : f32
    %44 = vector.broadcast %cst_42 : f32 to vector<8x16xf32>
    %45 = arith.addf %44, %43 : vector<8x16xf32>
    %46 = arith.divf %44, %45 : vector<8x16xf32>
    %c0_43 = arith.constant 0 : index
    %c1_44 = arith.constant 1 : index
    %c0_45 = arith.constant 0 : index
    %c0_46 = arith.constant 0 : index
    %47 = vector.load %arg10[%c0_43, %c1_44, %c0_45, %c0_46] : memref<1x4x8x16xf32, #tpu.memory_space<vmem>>, vector<1x1x8x16xf32>
    %48 = vector.shape_cast %47 : vector<1x1x8x16xf32> to vector<8x16xf32>
    %49 = vector.shape_cast %46 : vector<8x16xf32> to vector<1x1x8x16xf32>
    tpu.vector_store %arg10[%c0_43, %c1_44, %c0_45, %c0_46], %49 {strides = array<i32>} : memref<1x4x8x16xf32, #tpu.memory_space<vmem>>, vector<1x1x8x16xf32>,
    %cst_47 = arith.constant dense<0.000000e+00> : vector<8x8xf32>
    %50 = tpu.matmul %46, %38, %cst_47 {dimension_numbers = #tpu.dot_dimension_numbers<[1], [0], [0], [1], [0, 0, 1, 1], [], []>} : vector<8x16xf32>, vector<16x8xf32>, vector<8x8xf32> -> vector<8x8xf32>
    %c1_48 = arith.constant 1 : index
    %c0_49 = arith.constant 0 : index
    %c0_50 = arith.constant 0 : index
    %51 = vector.load %arg7[%c1_48, %c0_49, %c0_50] : memref<4x8x32xf32, #tpu.memory_space<vmem>>, vector<1x8x32xf32>
    %52 = vector.shape_cast %51 : vector<1x8x32xf32> to vector<8x32xf32>
    %cst_51 = arith.constant dense<0.000000e+00> : vector<8x32xf32>
    %53 = tpu.matmul %50, %52, %cst_51 {dimension_numbers = #tpu.dot_dimension_numbers<[1], [0], [0], [1], [0, 0, 1, 1], [], []>} : vector<8x8xf32>, vector<8x32xf32>, vector<8x32xf32> -> vector<8x32xf32>
    %54 = arith.addf %29, %53 : vector<8x32xf32>
    %c2 = arith.constant 2 : index
    %c0_52 = arith.constant 0 : index
    %c0_53 = arith.constant 0 : index
    %55 = vector.load %arg4[%c2, %c0_52, %c0_53] : memref<4x32x8xf32, #tpu.memory_space<vmem>>, vector<1x32x8xf32>
    %56 = vector.shape_cast %55 : vector<1x32x8xf32> to vector<32x8xf32>
    %cst_54 = arith.constant dense<0.000000e+00> : vector<8x8xf32>
    %57 = tpu.matmul %1, %56, %cst_54 {dimension_numbers = #tpu.dot_dimension_numbers<[1], [0], [0], [1], [0, 0, 1, 1], [], []>} : vector<8x32xf32>, vector<32x8xf32>, vector<8x8xf32> -> vector<8x8xf32>
    %c2_55 = arith.constant 2 : index
    %c0_56 = arith.constant 0 : index
    %c0_57 = arith.constant 0 : index
    %58 = vector.load %arg5[%c2_55, %c0_56, %c0_57] : memref<4x16x8xf32, #tpu.memory_space<vmem>>, vector<1x16x8xf32>
    %59 = vector.shape_cast %58 : vector<1x16x8xf32> to vector<16x8xf32>
    %cst_58 = arith.constant dense<0.000000e+00> : vector<16x8xf32>
    %60 = tpu.matmul %3, %59, %cst_58 {dimension_numbers = #tpu.dot_dimension_numbers<[1], [0], [0], [1], [0, 0, 1, 1], [], []>} : vector<16x16xf32>, vector<16x8xf32>, vector<16x8xf32> -> vector<16x8xf32>
    %c2_59 = arith.constant 2 : index
    %c0_60 = arith.constant 0 : index
    %c0_61 = arith.constant 0 : index
    %61 = vector.load %arg6[%c2_59, %c0_60, %c0_61] : memref<4x16x8xf32, #tpu.memory_space<vmem>>, vector<1x16x8xf32>
    %62 = vector.shape_cast %61 : vector<1x16x8xf32> to vector<16x8xf32>
    %cst_62 = arith.constant dense<0.000000e+00> : vector<16x8xf32>
    %63 = tpu.matmul %3, %62, %cst_62 {dimension_numbers = #tpu.dot_dimension_numbers<[1], [0], [0], [1], [0, 0, 1, 1], [], []>} : vector<16x16xf32>, vector<16x8xf32>, vector<16x8xf32> -> vector<16x8xf32>
    %cst_63 = arith.constant dense<0.000000e+00> : vector<8x16xf32>
    %64 = tpu.matmul %57, %60, %cst_63 {dimension_numbers = #tpu.dot_dimension_numbers<[1], [1], [0], [0], [0, 0, 1, 0], [], []>} : vector<8x8xf32>, vector<16x8xf32>, vector<8x16xf32> -> vector<8x16xf32>
    %cst_64 = arith.constant -2.77258873 : f32
    %65 = vector.broadcast %cst_64 : f32 to vector<8x16xf32>
    %66 = arith.addf %64, %65 : vector<8x16xf32>
    %67 = arith.negf %66 : vector<8x16xf32>
    %68 = math.exp %67 : vector<8x16xf32>
    %cst_65 = arith.constant 1.000000e+00 : f32
    %69 = vector.broadcast %cst_65 : f32 to vector<8x16xf32>
    %70 = arith.addf %69, %68 : vector<8x16xf32>
    %71 = arith.divf %69, %70 : vector<8x16xf32>
    %c0_66 = arith.constant 0 : index
    %c2_67 = arith.constant 2 : index
    %c0_68 = arith.constant 0 : index
    %c0_69 = arith.constant 0 : index
    %72 = vector.load %arg10[%c0_66, %c2_67, %c0_68, %c0_69] : memref<1x4x8x16xf32, #tpu.memory_space<vmem>>, vector<1x1x8x16xf32>
    %73 = vector.shape_cast %72 : vector<1x1x8x16xf32> to vector<8x16xf32>
    %74 = vector.shape_cast %71 : vector<8x16xf32> to vector<1x1x8x16xf32>
    tpu.vector_store %arg10[%c0_66, %c2_67, %c0_68, %c0_69], %74 {strides = array<i32>} : memref<1x4x8x16xf32, #tpu.memory_space<vmem>>, vector<1x1x8x16xf32>,
    %cst_70 = arith.constant dense<0.000000e+00> : vector<8x8xf32>
    %75 = tpu.matmul %71, %63, %cst_70 {dimension_numbers = #tpu.dot_dimension_numbers<[1], [0], [0], [1], [0, 0, 1, 1], [], []>} : vector<8x16xf32>, vector<16x8xf32>, vector<8x8xf32> -> vector<8x8xf32>
    %c2_71 = arith.constant 2 : index
    %c0_72 = arith.constant 0 : index
    %c0_73 = arith.constant 0 : index
    %76 = vector.load %arg7[%c2_71, %c0_72, %c0_73] : memref<4x8x32xf32, #tpu.memory_space<vmem>>, vector<1x8x32xf32>
    %77 = vector.shape_cast %76 : vector<1x8x32xf32> to vector<8x32xf32>
    %cst_74 = arith.constant dense<0.000000e+00> : vector<8x32xf32>
    %78 = tpu.matmul %75, %77, %cst_74 {dimension_numbers = #tpu.dot_dimension_numbers<[1], [0], [0], [1], [0, 0, 1, 1], [], []>} : vector<8x8xf32>, vector<8x32xf32>, vector<8x32xf32> -> vector<8x32xf32>
    %79 = arith.addf %54, %78 : vector<8x32xf32>
    %c3 = arith.constant 3 : index
    %c0_75 = arith.constant 0 : index
    %c0_76 = arith.constant 0 : index
    %80 = vector.load %arg4[%c3, %c0_75, %c0_76] : memref<4x32x8xf32, #tpu.memory_space<vmem>>, vector<1x32x8xf32>
    %81 = vector.shape_cast %80 : vector<1x32x8xf32> to vector<32x8xf32>
    %cst_77 = arith.constant dense<0.000000e+00> : vector<8x8xf32>
    %82 = tpu.matmul %1, %81, %cst_77 {dimension_numbers = #tpu.dot_dimension_numbers<[1], [0], [0], [1], [0, 0, 1, 1], [], []>} : vector<8x32xf32>, vector<32x8xf32>, vector<8x8xf32> -> vector<8x8xf32>
    %c3_78 = arith.constant 3 : index
    %c0_79 = arith.constant 0 : index
    %c0_80 = arith.constant 0 : index
    %83 = vector.load %arg5[%c3_78, %c0_79, %c0_80] : memref<4x16x8xf32, #tpu.memory_space<vmem>>, vector<1x16x8xf32>
    %84 = vector.shape_cast %83 : vector<1x16x8xf32> to vector<16x8xf32>
    %cst_81 = arith.constant dense<0.000000e+00> : vector<16x8xf32>
    %85 = tpu.matmul %3, %84, %cst_81 {dimension_numbers = #tpu.dot_dimension_numbers<[1], [0], [0], [1], [0, 0, 1, 1], [], []>} : vector<16x16xf32>, vector<16x8xf32>, vector<16x8xf32> -> vector<16x8xf32>
    %c3_82 = arith.constant 3 : index
    %c0_83 = arith.constant 0 : index
    %c0_84 = arith.constant 0 : index
    %86 = vector.load %arg6[%c3_82, %c0_83, %c0_84] : memref<4x16x8xf32, #tpu.memory_space<vmem>>, vector<1x16x8xf32>
    %87 = vector.shape_cast %86 : vector<1x16x8xf32> to vector<16x8xf32>
    %cst_85 = arith.constant dense<0.000000e+00> : vector<16x8xf32>
    %88 = tpu.matmul %3, %87, %cst_85 {dimension_numbers = #tpu.dot_dimension_numbers<[1], [0], [0], [1], [0, 0, 1, 1], [], []>} : vector<16x16xf32>, vector<16x8xf32>, vector<16x8xf32> -> vector<16x8xf32>
    %cst_86 = arith.constant dense<0.000000e+00> : vector<8x16xf32>
    %89 = tpu.matmul %82, %85, %cst_86 {dimension_numbers = #tpu.dot_dimension_numbers<[1], [1], [0], [0], [0, 0, 1, 0], [], []>} : vector<8x8xf32>, vector<16x8xf32>, vector<8x16xf32> -> vector<8x16xf32>
    %cst_87 = arith.constant -2.77258873 : f32
    %90 = vector.broadcast %cst_87 : f32 to vector<8x16xf32>
    %91 = arith.addf %89, %90 : vector<8x16xf32>
    %92 = arith.negf %91 : vector<8x16xf32>
    %93 = math.exp %92 : vector<8x16xf32>
    %cst_88 = arith.constant 1.000000e+00 : f32
    %94 = vector.broadcast %cst_88 : f32 to vector<8x16xf32>
    %95 = arith.addf %94, %93 : vector<8x16xf32>
    %96 = arith.divf %94, %95 : vector<8x16xf32>
    %c0_89 = arith.constant 0 : index
    %c3_90 = arith.constant 3 : index
    %c0_91 = arith.constant 0 : index
    %c0_92 = arith.constant 0 : index
    %97 = vector.load %arg10[%c0_89, %c3_90, %c0_91, %c0_92] : memref<1x4x8x16xf32, #tpu.memory_space<vmem>>, vector<1x1x8x16xf32>
    %98 = vector.shape_cast %97 : vector<1x1x8x16xf32> to vector<8x16xf32>
    %99 = vector.shape_cast %96 : vector<8x16xf32> to vector<1x1x8x16xf32>
    tpu.vector_store %arg10[%c0_89, %c3_90, %c0_91, %c0_92], %99 {strides = array<i32>} : memref<1x4x8x16xf32, #tpu.memory_space<vmem>>, vector<1x1x8x16xf32>,
    %cst_93 = arith.constant dense<0.000000e+00> : vector<8x8xf32>
    %100 = tpu.matmul %96, %88, %cst_93 {dimension_numbers = #tpu.dot_dimension_numbers<[1], [0], [0], [1], [0, 0, 1, 1], [], []>} : vector<8x16xf32>, vector<16x8xf32>, vector<8x8xf32> -> vector<8x8xf32>
    %c3_94 = arith.constant 3 : index
    %c0_95 = arith.constant 0 : index
    %c0_96 = arith.constant 0 : index
    %101 = vector.load %arg7[%c3_94, %c0_95, %c0_96] : memref<4x8x32xf32, #tpu.memory_space<vmem>>, vector<1x8x32xf32>
    %102 = vector.shape_cast %101 : vector<1x8x32xf32> to vector<8x32xf32>
    %cst_97 = arith.constant dense<0.000000e+00> : vector<8x32xf32>
    %103 = tpu.matmul %100, %102, %cst_97 {dimension_numbers = #tpu.dot_dimension_numbers<[1], [0], [0], [1], [0, 0, 1, 1], [], []>} : vector<8x8xf32>, vector<8x32xf32>, vector<8x32xf32> -> vector<8x32xf32>
    %104 = arith.addf %79, %103 : vector<8x32xf32>
    %c0_98 = arith.constant 0 : index
    %c0_99 = arith.constant 0 : index
    %105 = vector.load %arg8[%c0_98, %c0_99] : memref<1x32xf32, #tpu.memory_space<vmem>>, vector<1x32xf32>
    %106 = vector.broadcast %105 : vector<1x32xf32> to vector<8x32xf32>
    %107 = arith.addf %104, %106 : vector<8x32xf32>
    %c0_100 = arith.constant 0 : index
    %c0_101 = arith.constant 0 : index
    %c0_102 = arith.constant 0 : index
    %108 = vector.load %arg9[%c0_100, %c0_101, %c0_102] : memref<1x8x32xf32, #tpu.memory_space<vmem>>, vector<1x8x32xf32>
    %109 = vector.shape_cast %108 : vector<1x8x32xf32> to vector<8x32xf32>
    %110 = vector.shape_cast %107 : vector<8x32xf32> to vector<1x8x32xf32>
    tpu.vector_store %arg9[%c0_100, %c0_101, %c0_102], %110 {strides = array<i32>} : memref<1x8x32xf32, #tpu.memory_space<vmem>>, vector<1x8x32xf32>,
    return
  }
  func.func @transform_0(%arg0: i32, %arg1: i32) -> (i32, i32, i32) {
    %c0_i32 = arith.constant 0 : i32
    %c0_i32_0 = arith.constant 0 : i32
    return %arg0, %arg1, %c0_i32 : i32, i32, i32
  }
  func.func @transform_1(%arg0: i32, %arg1: i32) -> (i32, i32, i32) {
    %c0_i32 = arith.constant 0 : i32
    %c0_i32_0 = arith.constant 0 : i32
    %c0_i32_1 = arith.constant 0 : i32
    return %arg0, %c0_i32, %c0_i32_0 : i32, i32, i32
  }
  func.func @transform_2(%arg0: i32, %arg1: i32) -> (i32, i32, i32) {
    %c0_i32 = arith.constant 0 : i32
    %c0_i32_0 = arith.constant 0 : i32
    %c0_i32_1 = arith.constant 0 : i32
    %c0_i32_2 = arith.constant 0 : i32
    return %c0_i32, %c0_i32_0, %c0_i32_1 : i32, i32, i32
  }
  func.func @transform_3(%arg0: i32, %arg1: i32) -> (i32, i32, i32) {
    %c0_i32 = arith.constant 0 : i32
    %c0_i32_0 = arith.constant 0 : i32
    %c0_i32_1 = arith.constant 0 : i32
    %c0_i32_2 = arith.constant 0 : i32
    return %c0_i32, %c0_i32_0, %c0_i32_1 : i32, i32, i32
  }
  func.func @transform_4(%arg0: i32, %arg1: i32) -> (i32, i32, i32) {
    %c0_i32 = arith.constant 0 : i32
    %c0_i32_0 = arith.constant 0 : i32
    %c0_i32_1 = arith.constant 0 : i32
    %c0_i32_2 = arith.constant 0 : i32
    return %c0_i32, %c0_i32_0, %c0_i32_1 : i32, i32, i32
  }
  func.func @transform_5(%arg0: i32, %arg1: i32) -> (i32, i32, i32) {
    %c0_i32 = arith.constant 0 : i32
    %c0_i32_0 = arith.constant 0 : i32
    %c0_i32_1 = arith.constant 0 : i32
    %c0_i32_2 = arith.constant 0 : i32
    return %c0_i32, %c0_i32_0, %c0_i32_1 : i32, i32, i32
  }
  func.func @transform_6(%arg0: i32, %arg1: i32) -> (i32, i32) {
    %c0_i32 = arith.constant 0 : i32
    %c0_i32_0 = arith.constant 0 : i32
    %c0_i32_1 = arith.constant 0 : i32
    return %c0_i32, %c0_i32_0 : i32, i32
  }
  func.func @transform_7(%arg0: i32, %arg1: i32) -> (i32, i32, i32) {
    %c0_i32 = arith.constant 0 : i32
    %c0_i32_0 = arith.constant 0 : i32
    return %arg0, %arg1, %c0_i32 : i32, i32, i32
  }
  func.func @transform_8(%arg0: i32, %arg1: i32) -> (i32, i32, i32, i32) {
    %c0_i32 = arith.constant 0 : i32
    %c0_i32_0 = arith.constant 0 : i32
    %c0_i32_1 = arith.constant 0 : i32
    return %arg0, %c0_i32, %arg1, %c0_i32_0 : i32, i32, i32, i32
  }
}

</mosaic_0001>

<bundles_post_ra>
// kernel: tpu_custom_call.1
= control target key start
LH: loop header
LB: loop body
LE: loop exit
PB: predicated region body
PF: predicated region fallthrough
CT: control target
= control target key end

     0   :  { %s3483_s0 = inlined_call_operand.vmem [shape: f32[2,8,32], index: 0, kind: input, shape index: {}]   ;;  %s3484_s1 = inlined_call_operand.vmem [shape: f32[2,16,16], index: 1, kind: input, shape index: {}]   ;;  %s3485_s2 = inlined_call_operand.vmem [shape: f32[4,32,8], index: 2, kind: input, shape index: {}]   ;;  %s3486_s3 = inlined_call_operand.vmem [shape: f32[4,16,8], index: 3, kind: input, shape index: {}]   ;;  %s3487_s4 = inlined_call_operand.vmem [shape: f32[4,16,8], index: 4, kind: input, shape index: {}]   ;;  %s3488_s5 = inlined_call_operand.vmem [shape: f32[4,8,32], index: 5, kind: input, shape index: {}]   ;;  %s3489_s6 = inlined_call_operand.vmem [shape: f32[1,32], index: 6, kind: input, shape index: {}]   ;;  %s3490_s7 = inlined_call_operand.hbm [shape: f32[2,8,32], index: 7, kind: output, shape index: {0}]   ;;  %s3491_s8 = inlined_call_operand.hbm [shape: f32[2,4,8,16], index: 8, kind: output, shape index: {1}]  }
   0x1   :  { %3492 = sst [smem:[#allocation8_spill]] %s3483_s0 }
   0x2   :  { %3493 = sst [smem:[#allocation9_spill]] %s3484_s1 }
   0x3   :  { %3494 = sst [smem:[#allocation10_spill]] %s3485_s2 }
   0x4   :  { %14 = vsyncpa [#allocation3], 0 }
   0x5   :  { %16 = vsyncpa [#allocation3 + $0x1], 0 }
   0x6   :  { %17 = vsyncpa [#allocation5], 0 }
   0x7   :  { %19 = vsyncpa [#allocation5 + $0x1], 0  ;;  %s3081_s27 = smov 0   ;;  %s3083_s28 = smov 0  }
   0x8   :  { %s3085_s29 = smov 0   ;;  %s3087_s30 = smov 0  }
   0x9   :  { %s3089_s9 = smov 0   ;;  %s3091_s10 = smov 0  }
   0xa LB: > { %s2398_s11 = sadd.s32 4294967295, %s3027_s10   ;;  %s2399_s12 = sadd.s32 4294967294, %s3027_s10   ;;  %s3027_s10 = sphi %s3091_s10, %s25_s10   ;;  %s3023_s9 = sphi %s3089_s9, %s3506_s9   ;;  %s3019_s30 = sphi %s3087_s30, %s3505_s30   ;;  %s3015_s29 = sphi %s3085_s29, %s3504_s29   ;;  %s3011_s28 = sphi %s3083_s28, %s3503_s28   ;;  %s3007_s27 = sphi %s3081_s27, %s3502_s27  }
   0xb   : > { %s37_s13 = sadd.s32 1, %s3023_s9  ;;  %s205_s14 = sadd.s32 1, %s3015_s29 }
   0xc   : > { %p39_p0 = scmp.ge.s32.totalorder %s37_s13, 2  ;;  %p215_p1 = scmp.ne.s32.totalorder %s3015_s29, %s3011_s28 }
   0xd   : > { %p216_p2 = scmp.eq.s32.totalorder %s2398_s11, 1  ;;  %p221_p3 = scmp.ne.s32.totalorder %s3011_s28, %s3007_s27 }
   0xe   : > { %s3508_s13 = smov (%p39_p0, %s37_s13), 0  ;;  %p222_p5 = scmp.eq.s32.totalorder %s2399_s12, 1 }
   0xf   : > { %p3121_p4 = por %p216_p2, %p215_p1  ;;  %s200_s16 = ssub.s32 %s3023_s9, %s3508_s13 }
  0x10   : > { %p2402_p6 = scmp.ge.s32.totalorder %s3027_s10, 1  ;;  %p203_p7 = scmp.eq.s32.totalorder %s200_s16, 0 }
  0x11   : > { %p3128_p8 = por %p222_p5, %p221_p3  ;;  %p301_p9 = scmp.lt.s32.totalorder %s3027_s10, 3 }
  0x12   : > { %s3134_s18 = scalar_select %p203_p7, %s3015_s29, %s205_s14  }
  0x13   : > { %p302_p10 = pnand %p2402_p6, %p301_p9 }
  0x14   : > { %v440_v0 = vld [vmem:[%s3486_s3] sm:$0xff] (!%p302_p10)  ;;  %v441_v1 = vld [vmem:[%s3486_s3 + $0x8] sm:$0xff] (!%p302_p10)  ;;  %p347_p11 = scmp.lt.s32.totalorder (!%p302_p10), %s3019_s30, 1  ;;  %s3497_s2 = sld [smem:[#allocation10_spill]] (!%p302_p10)  ;;  %v3029_v4 = vmov (!%p302_p10), 0.0|0.0   ;;  %vm3030_vm0 = vmmov (!%p302_p10), 0  }
  0x15   : > { %305 = sbr.rel (%p302_p10) target bundleno = 2748 (0xabc), region = 48  ;;  %v2758_v3 = vpack.c.bf16 (!%p302_p10), %v441_v1, %v440_v0  ;;  %2752 = vmatprep.subr.bf16.mxu0 (!%p302_p10), %v3029_v4  ;;  %v3031_v9 = vmov (!%p302_p10), 0.0   ;;  %vm442_vm1 = vcmask (!%p302_p10), 130048   ;;  %s3498_s1 = sld [smem:[#allocation9_spill]] (!%p302_p10)  ;;  %vm366_vm2 = vcmask (!%p302_p10), 261120   ;;  %v524_v14 = vld [vmem:[%s3487_s4] sm:$0xff] (!%p302_p10) }
  0x16   : > { %2584 = vmatprep.mubr.msk.f32.mxu0 (!%p302_p10), %vm3030_vm0, %v3031_v9  ;;  %s3499_s0 = sld [smem:[#allocation8_spill]] (!%p302_p10)  ;;  %v525_v15 = vld [vmem:[%s3487_s4 + $0x8] sm:$0xff] (!%p302_p10)  ;;  %vm601_vm3 = vcmask (!%p302_p10), 64512   ;;  %v2423_v24 = vld [vmem:[%s3486_s3 + $0x10] sm:$0xff] (!%p302_p10)  ;;  %v2424_v25 = vld [vmem:[%s3486_s3 + $0x18] sm:$0xff] (!%p302_p10)  ;;  %s3032_s25 = smov (!%p302_p10), [#allocation4]  }
  0x17   : > { %2759 = vmatprep.subr.bf16.mxu1 (!%p302_p10), %v2758_v3  ;;  %v2762_v16 = vpack.c.bf16 (!%p302_p10), %v525_v15, %v524_v14  ;;  %vm3196_vm4 = vmpackc.low (!%p302_p10), %vm601_vm3, %vm601_vm3  ;;  %v2779_v27 = vpack.c.bf16 (!%p302_p10), %v2424_v25, %v2423_v24  ;;  %v2427_v45 = vld [vmem:[%s3487_s4 + $0x10] sm:$0xff] (!%p302_p10)  ;;  %v2428_v46 = vld [vmem:[%s3487_s4 + $0x18] sm:$0xff] (!%p302_p10)  ;;  %s2921_s26 = sshll.u32 (!%p302_p10), %s3032_s25, 4  ;;  %s2922_s26 = int_to_ptr.vmem [resolvable:$false] %s2921_s26 }
  0x18   : > { %2761 = vmatpush3.bf16.msra.mxu1 (!%p302_p10), %v2758_v3  ;;  %v2783_v47 = vpack.c.bf16 (!%p302_p10), %v2428_v46, %v2427_v45  ;;  %v761_v50 = vld [vmem:[%s3488_s5] sm:$0xff] (!%p302_p10)  ;;  %v2446_v57 = vld [vmem:[%s3486_s3 + $0x28] sm:$0xff] (!%p302_p10) }
  0x19   : > { %2763 = vmatprep.subr.bf16.mxu1 (!%p302_p10), %v2762_v16  ;;  %v2445_v56 = vld [vmem:[%s3486_s3 + $0x20] sm:$0xff] (!%p302_p10)  ;;  %v2437_v3 = vld [vmem:[%s3488_s5 + $0x8] sm:$0xff] (!%p302_p10) }
  0x1a   : > { %v362_v2 = vld [vmem:[%s3497_s2] sm:$0xff] (!%p302_p10)  ;;  %v363_v5 = vld [vmem:[%s3497_s2 + $0x8] sm:$0xff] (!%p302_p10)  ;;  %v364_v6 = vld [vmem:[%s3497_s2 + $0x10] sm:$0xff] (!%p302_p10)  ;;  %v2800_v58 = vpack.c.bf16 (!%p302_p10), %v2446_v57, %v2445_v56 }
  0x1b   : > { %v365_v7 = vld [vmem:[%s3497_s2 + $0x18] sm:$0xff] (!%p302_p10)  ;;  %v2753_v8 = vpack.c.bf16 (!%p302_p10), %v363_v5, %v362_v2  ;;  %v2418_v35 = vld [vmem:[%s3497_s2 + $0x20] sm:$0xff] (!%p302_p10)  ;;  %v2419_v36 = vld [vmem:[%s3497_s2 + $0x28] sm:$0xff] (!%p302_p10) }
  0x1c   : > { %s348_s19 = scalar_select %p347_p11, %s3019_s30, 1  ;;  %v2756_v10 = vpack.c.bf16 %v365_v7, %v364_v6  ;;  %v2774_v37 = vpack.c.bf16 %v2419_v36, %v2418_v35  ;;  %v2420_v38 = vld [vmem:[%s3497_s2 + $0x30] sm:$0xff]  ;;  %v2421_v39 = vld [vmem:[%s3497_s2 + $0x38] sm:$0xff]  ;;  %v2441_v14 = vld [vmem:[%s3497_s2 + $0x48] sm:$0xff] }
  0x1d   : > { %2754 = vmatpush3.bf16.msra.mxu0 %v2753_v8  ;;  %v2777_v41 = vpack.c.bf16 %v2421_v39, %v2420_v38  ;;  %v2459_v39 = vld [vmem:[%s3488_s5 + $0x10] sm:$0xff]  ;;  %v2462_v45 = vld [vmem:[%s3497_s2 + $0x68] sm:$0xff] }
  0x1e   : > { %s2490_s20 = sshll.u32 %s348_s19, 4  ;;  %s2405_s21 = sshll.u32 %s348_s19, 3  ;;  %2755 = vmatprep.subr.bf16.mxu0 %v3029_v4 }
  0x1f   : > { %s358_s24 = scalar_lea.vmem %s3498_s1, %s2490_s20  ;;  %s353_s11 = scalar_lea.vmem %s3499_s0, %s2405_s21 }
  0x20   : > { %v3166_v11 = vld [vmem:[%s358_s24] sm:$0xff]  ;;  %v3168_v12 = vld [vmem:[%s358_s24 + $0x8] sm:$0xff]  ;;  %s3217_s24 = sand.u32 1, %s3011_s28  }
  0x21   : > { %2591 = vmatprep.mubr.msk.f32.mxu1 %vm442_vm1, %v3166_v11  ;;  %2757 = vmatpush3.bf16.msra.mxu0 %v2756_v10  ;;  %v3174_v13 = vld [vmem:[%s353_s11] sm:$0xff]  ;;  %s2404_s14 = sshll.u32 %s3217_s24, 5  ;;  %s2250_s21 = scalar_lea.sflag [#allocation5], %s3217_s24 }
  0x22   : > { %2592 = vmatmul.mubr.msk.f32.vlgmr.msra.gmra.mrb[0].mxu1 %vm442_vm1, %v3168_v12  ;;  %2766 = vmatprep.subr.bf16.mxu0 %v3029_v4  ;;  %s3233_s22 = scalar_lea.vmem [#allocation4], %s2404_s14  ;;  %v2440_v10 = vld [vmem:[%s3497_s2 + $0x40] sm:$0xff]  ;;  %s2491_s14 = sshll.u32 %s3019_s30, 9 }
  0x23   : > { %2598 = vmatprep.mubr.msk.f32.mxu1 %vm442_vm1, %v3166_v11  ;;  %2765 = vmatpush3.bf16.msra.mxu1 %v2762_v16  ;;  %v2795_v15 = vpack.c.bf16 %v2441_v14, %v2440_v10  ;;  %v2442_v16 = vld [vmem:[%s3497_s2 + $0x50] sm:$0xff]  ;;  %s2278_s12 = sshll.u32 %s3233_s22, 4  ;;  %s3399_s20 = scalar_lea.hbm %s3491_s8, %s2491_s14  ;;  %s3394_s12 = int_to_ptr.vmem [resolvable:$true] %s2278_s12 }
  0x24   : > { %2585 = vmatmul.mubr.msk.f32.vlgmr.msra.gmra.mrb[0].mxu0 %vm366_vm2, %v3174_v13  ;;  %2770 = vmatprep.subr.bf16.mxu1 %v3029_v4  ;;  %s2917_s23 = scalar_lea.vmem %s3394_s12, 512  ;;  %p2924_p1 = scmp.lt.s32.totalorder %s3394_s12, %s2922_s26 }
  0x25   : > { %2605 = vmatprep.mubr.msk.f32.mxu0 %vm3030_vm0, %v3031_v9  ;;  %p2918_p12 = scmp.ne.s32.totalorder %s3394_s12, %s2917_s23 }
  0x26   : > { %2599 = vmatmul.mubr.msk.f32.vlgmr.msra.gmra.mrb[2].mxu1 %vm442_vm1, %v3168_v12 }
  0x27   : > { %2612 = vmatprep.mubr.msk.f32.mxu1 %vm3030_vm0, %v3031_v9  ;;  %p2919_p13 = pnand %p2918_p12, %p3121_p4 }
  0x29   : > { %p2920_p0 = pneg %p2919_p13 }
  0xf5   : > { %v2593_v17 = vpop.f32.mrb[0].mxu1 }
  0xf6   : > { %v515_v18 = vpop.f32.mrb[1].mxu1 }
  0xf7   : > { %v2767_v20 = vpack.c.bf16 %v2593_v17, %v515_v18  ;;  %v436_v21 = vpop.f32.mrb[0].mxu0  ;;  %v2443_v17 = vld [vmem:[%s3497_s2 + $0x58] sm:$0xff] }
  0xf8   : > { %v2586_v22 = vpop.f32.mrb[1].mxu0 }
  0xf9   : > { %2769 = vmatpush3.bf16.xpose.msk.msra.mxu0 %vm3196_vm4, %v2767_v20  ;;  %v2600_v23 = vpop.f32.mrb[2].mxu1  ;;  %v2449_v22 = vld [vmem:[%s3487_s4 + $0x20] sm:$0xff] }
  0xfa   : > { %v592_v26 = vpop.f32.mrb[3].mxu1  ;;  %2780 = vmatprep.subr.bf16.mxu0 %v2779_v27 }
  0xfb   : > { %v2771_v28 = vpack.c.bf16 %v2600_v23, %v592_v26  ;;  %v2450_v23 = vld [vmem:[%s3487_s4 + $0x28] sm:$0xff] }
  0xfc   : > { %v2804_v24 = vpack.c.bf16 %v2450_v23, %v2449_v22 }
  0xfd   : > { %2772 = vmatpush3.bf16.msra.mxu1 %v2771_v28 }
  0xfe   : > { %2773 = vmatprep.subr.bf16.mxu1 %v3029_v4 }
 0x100   : > { %2606 = vmatmul.mubr.msk.f32.vlgmr.msra.gmra.mrb[2].mxu0 %vm601_vm3, %v436_v21  ;;  %v2798_v21 = vpack.c.bf16 %v2443_v17, %v2442_v16 }
 0x101   : > { %2630 = vmatprep.mubr.msk.f32.mxu0 %vm442_vm1, %v3166_v11  ;;  %2782 = vmatpush3.bf16.msra.mxu0 %v2779_v27 }
 0x102   : > { %2784 = vmatprep.subr.bf16.mxu0 %v2783_v47 }
 0x104   : > { %2631 = vmatmul.mubr.msk.f32.vlgmr.msra.gmra.mrb[4].mxu0 %vm442_vm1, %v3168_v12 }
 0x105   : > { %2637 = vmatprep.mubr.msk.f32.mxu0 %vm442_vm1, %v3166_v11  ;;  %2786 = vmatpush3.bf16.msra.mxu0 %v2783_v47  ;;  %v2463_v47 = vld [vmem:[%s3497_s2 + $0x70] sm:$0xff] }
 0x106   : > { %2791 = vmatprep.subr.bf16.mxu0 %v3029_v4 }
 0x108   : > { %2638 = vmatmul.mubr.msk.f32.vlgmr.msra.gmra.mrb[6].mxu0 %vm442_vm1, %v3168_v12 }
 0x109   : > { %2651 = vmatprep.mubr.msk.f32.mxu0 %vm3030_vm0, %v3031_v9 }
 0x1d3   : > { %v677_v29 = vpop.f32.mrb[2].mxu0 }
 0x1d4   : > { %v678_v30 = vadd.f32 -2.7725887, %v677_v29  ;;  %v2607_v31 = vpop.f32.mrb[3].mxu0 }
 0x1d6   : > { %v2416_v32 = vmul.f32 -1.442695, %v678_v30 }
 0x1d7   : > { %v2632_v42 = vpop.f32.mrb[4].mxu0 }
 0x1d8   : > { %2901 = vpow2.f32 %v2416_v32  ;;  %v906_v43 = vpop.f32.mrb[5].mxu0 }
 0x1d9   : > { %v2788_v44 = vpack.c.bf16 %v2632_v42, %v906_v43  ;;  %v2467_v42 = vld [vmem:[%s3486_s3 + $0x38] sm:$0xff] }
 0x1db   : > { %v2639_v53 = vpop.f32.mrb[6].mxu0 }
 0x1dc   : > { %v984_v54 = vpop.f32.mrb[7].mxu0 }
 0x1dd   : > { %v2792_v55 = vpack.c.bf16 %v2639_v53, %v984_v54  ;;  %v2471_v54 = vld [vmem:[%s3487_s4 + $0x38] sm:$0xff] }
 0x1df   : > { %2793 = vmatpush3.bf16.msra.mxu0 %v2792_v55 }
 0x1e0   : > { %2654 = vmatprep.subr.mxu0 %v3031_v9 }
 0x1e2   : > { %v2902_v33 = vpop.eup %2901 }
 0x1e3   : > { %v684_v34 = vadd.f32 1.0, %v2902_v33 }
 0x1e5   : > { %2903 = vrcp.f32 %v684_v34 }
 0x1ef   : > { %v2904_v40 = vpop.eup %2903 }
 0x1f0   : > { %2613 = vmatmul.mubr.msk.f32.vlgmr.msra.gmra.mrb[4].mxu1 %vm442_vm1, %v2904_v40  ;;  %687 = vst.msk [vmem:[%s3233_s22] sm:$0xff] %vm442_vm1, %v2904_v40 }
 0x1f1   : > { %2775 = vmatpush3.bf16.msra.mxu1 %v2774_v37  ;;  %2623 = vmatprep.mubr.msk.f32.mxu1 %vm3030_vm0, %v3031_v9 }
 0x1f2   : > { %2776 = vmatprep.subr.bf16.mxu1 %v3029_v4 }
 0x1f5   : > { %2778 = vmatpush3.bf16.msra.mxu1 %v2777_v41  ;;  %v2466_v41 = vld [vmem:[%s3486_s3 + $0x30] sm:$0xff] }
 0x1f6   : > { %2787 = vmatprep.subr.bf16.mxu1 %v3029_v4  ;;  %v2821_v43 = vpack.c.bf16 %v2467_v42, %v2466_v41 }
 0x1f8   : > { %2624 = vmatmul.mubr.msk.f32.vlgmr.msra.gmra.mrb[6].mxu1 %vm366_vm2, %v3174_v13 }
 0x1f9   : > { %2644 = vmatprep.mubr.msk.f32.mxu1 %vm3030_vm0, %v3031_v9 }
 0x1fe   : > { %2790 = vmatpush3.bf16.xpose.msk.msra.mxu1 %vm3196_vm4, %v2788_v44  ;;  %v2461_v44 = vld [vmem:[%s3497_s2 + $0x60] sm:$0xff] }
 0x1ff   : > { %2659 = vmatprep.subr.mxu1 %v3031_v9  ;;  %v2816_v46 = vpack.c.bf16 %v2462_v45, %v2461_v44 }
 0x2c3   : > { %v757_v48 = vpop.f32.mrb[4].mxu1 }
 0x2c4   : > { %v2614_v49 = vpop.f32.mrb[5].mxu1 }
 0x2cb   : > { %v833_v51 = vpop.f32.mrb[6].mxu1 }
 0x2cc   : > { %v2625_v52 = vpop.f32.mrb[7].mxu1  ;;  %2645 = vmatmul.mubr.msk.f32.vlgmr.msra.gmra.mrb[8].mxu1 %vm601_vm3, %v833_v51 }
 0x2cd   : > { %2660 = vmatpush3.msra.mxu1 %v761_v50  ;;  %2661 = vmatprep.mubr.msk.f32.mxu1 %vm3030_vm0, %v3031_v9 }
 0x2ce   : > { %2801 = vmatprep.subr.bf16.mxu1 %v2800_v58 }
 0x2d0   : > { %2662 = vmatmul.mubr.msk.f32.vlgmr.msra.gmra.mrb[10].mxu1 %vm601_vm3, %v757_v48  ;;  %v2464_v48 = vld [vmem:[%s3497_s2 + $0x78] sm:$0xff] }
 0x2d1   : > { %2679 = vmatprep.mubr.msk.f32.mxu1 %vm442_vm1, %v3166_v11  ;;  %2803 = vmatpush3.bf16.msra.mxu1 %v2800_v58  ;;  %v2819_v49 = vpack.c.bf16 %v2464_v48, %v2463_v47 }
 0x2d2   : > { %2805 = vmatprep.subr.bf16.mxu1 %v2804_v24 }
 0x2d4   : > { %2680 = vmatmul.mubr.msk.f32.vlgmr.msra.gmra.mrb[12].mxu1 %vm442_vm1, %v3168_v12 }
 0x2d5   : > { %2686 = vmatprep.mubr.msk.f32.mxu1 %vm442_vm1, %v3166_v11  ;;  %2807 = vmatpush3.bf16.msra.mxu1 %v2804_v24 }
 0x2d6   : > { %2812 = vmatprep.subr.bf16.mxu1 %v3029_v4 }
 0x2d8   : > { %2687 = vmatmul.mubr.msk.f32.vlgmr.msra.gmra.mrb[14].mxu1 %vm442_vm1, %v3168_v12 }
 0x2d9   : > { %2700 = vmatprep.mubr.msk.f32.mxu1 %vm3030_vm0, %v3031_v9 }
 0x39f   : > { %v1068_v59 = vpop.f32.mrb[8].mxu1 }
 0x3a0   : > { %v1069_v60 = vadd.f32 -2.7725887, %v1068_v59  ;;  %v2646_v61 = vpop.f32.mrb[9].mxu1 }
 0x3a2   : > { %v2434_v62 = vmul.f32 -1.442695, %v1069_v60 }
 0x3a3   : > { %v1297_v63 = vpop.f32.mrb[10].mxu1 }
 0x3a4   : > { %2905 = vpow2.f32 %v2434_v62  ;;  %v2663_v0 = vpop.f32.mrb[11].mxu1 }
 0x3a7   : > { %v2681_v6 = vpop.f32.mrb[12].mxu1 }
 0x3a8   : > { %v1445_v7 = vpop.f32.mrb[13].mxu1 }
 0x3a9   : > { %v2809_v8 = vpack.c.bf16 %v2681_v6, %v1445_v7 }
 0x3ab   : > { %v2688_v30 = vpop.f32.mrb[14].mxu1 }
 0x3ac   : > { %v1523_v31 = vpop.f32.mrb[15].mxu1 }
 0x3ad   : > { %v2813_v32 = vpack.c.bf16 %v2688_v30, %v1523_v31 }
 0x3ae   : > { %v2906_v1 = vpop.eup %2905 }
 0x3af   : > { %v1075_v2 = vadd.f32 1.0, %v2906_v1  ;;  %2814 = vmatpush3.bf16.msra.mxu1 %v2813_v32 }
 0x3b0   : > { %2703 = vmatprep.subr.mxu1 %v3031_v9 }
 0x3b1   : > { %2907 = vrcp.f32 %v1075_v2 }
 0x3bb   : > { %v2908_v5 = vpop.eup %2907 }
 0x3bc   : > { %2652 = vmatmul.mubr.msk.f32.vlgmr.msra.gmra.mrb[8].mxu0 %vm442_vm1, %v2908_v5  ;;  %2435 = vst.msk [vmem:[%s3233_s22 + $0x8] sm:$0xff] %vm442_vm1, %v2908_v5 }
 0x3bd   : > { %2655 = vmatpush3.msra.mxu0 %v2437_v3  ;;  %2656 = vmatprep.mubr.msk.f32.mxu0 %vm3030_vm0, %v3031_v9  ;;  %v2480_v3 = vld [vmem:[%s3488_s5 + $0x18] sm:$0xff] }
 0x3be   : > { %2794 = vmatprep.subr.bf16.mxu0 %v3029_v4 }
 0x48f   : > { %v1149_v18 = vpop.f32.mrb[8].mxu0 }
 0x490   : > { %v2653_v20 = vpop.f32.mrb[9].mxu0  ;;  %2657 = vmatmul.mubr.msk.f32.vlgmr.msra.gmra.mrb[10].mxu0 %vm601_vm3, %v1149_v18 }
 0x491   : > { %2796 = vmatpush3.bf16.msra.mxu0 %v2795_v15  ;;  %2672 = vmatprep.mubr.msk.f32.mxu0 %vm3030_vm0, %v3031_v9 }
 0x492   : > { %2797 = vmatprep.subr.bf16.mxu0 %v3029_v4 }
 0x495   : > { %2799 = vmatpush3.bf16.msra.mxu0 %v2798_v21 }
 0x496   : > { %2808 = vmatprep.subr.bf16.mxu0 %v3029_v4 }
 0x498   : > { %2673 = vmatmul.mubr.msk.f32.vlgmr.msra.gmra.mrb[12].mxu0 %vm366_vm2, %v3174_v13 }
 0x499   : > { %2693 = vmatprep.mubr.msk.f32.mxu0 %vm3030_vm0, %v3031_v9 }
 0x49e   : > { %2811 = vmatpush3.bf16.xpose.msk.msra.mxu0 %vm3196_vm4, %v2809_v8 }
 0x49f   : > { %2815 = vmatprep.subr.bf16.mxu0 %v3029_v4 }
 0x563   : > { %v1224_v25 = vpop.f32.mrb[10].mxu0 }
 0x564   : > { %v1298_v26 = vadd.f32 %v1297_v63, %v1224_v25  ;;  %v2658_v27 = vpop.f32.mrb[11].mxu0 }
 0x56b   : > { %v1372_v28 = vpop.f32.mrb[12].mxu0 }
 0x56c   : > { %v2674_v29 = vpop.f32.mrb[13].mxu0  ;;  %2694 = vmatmul.mubr.msk.f32.vlgmr.msra.gmra.mrb[14].mxu0 %vm601_vm3, %v1372_v28 }
 0x56d   : > { %2716 = vmatprep.mubr.msk.f32.mxu0 %vm3030_vm0, %v3031_v9  ;;  %2817 = vmatpush3.bf16.msra.mxu0 %v2816_v46 }
 0x56e   : > { %2818 = vmatprep.subr.bf16.mxu0 %v3029_v4 }
 0x571   : > { %2820 = vmatpush3.bf16.msra.mxu0 %v2819_v49 }
 0x572   : > { %2829 = vmatprep.subr.bf16.mxu0 %v3029_v4 }
 0x574   : > { %2717 = vmatmul.mubr.msk.f32.vlgmr.msra.gmra.mrb[16].mxu0 %vm366_vm2, %v3174_v13  ;;  %v2470_v13 = vld [vmem:[%s3487_s4 + $0x30] sm:$0xff] }
 0x575   : > { %2737 = vmatprep.mubr.msk.f32.mxu0 %vm3030_vm0, %v3031_v9  ;;  %v2825_v55 = vpack.c.bf16 %v2471_v54, %v2470_v13 }
 0x63f   : > { %v1607_v33 = vpop.f32.mrb[14].mxu0 }
 0x640   : > { %v1608_v34 = vadd.f32 -2.7725887, %v1607_v33  ;;  %v2695_v35 = vpop.f32.mrb[15].mxu0 }
 0x642   : > { %v2456_v36 = vmul.f32 -1.442695, %v1608_v34 }
 0x644   : > { %2909 = vpow2.f32 %v2456_v36 }
 0x647   : > { %v1839_v52 = vpop.f32.mrb[16].mxu0 }
 0x648   : > { %v2718_v53 = vpop.f32.mrb[17].mxu0 }
 0x64e   : > { %v2910_v37 = vpop.eup %2909 }
 0x64f   : > { %v1614_v38 = vadd.f32 1.0, %v2910_v37 }
 0x651   : > { %2911 = vrcp.f32 %v1614_v38 }
 0x65b   : > { %v2912_v40 = vpop.eup %2911 }
 0x65c   : > { %2701 = vmatmul.mubr.msk.f32.vlgmr.msra.gmra.mrb[16].mxu1 %vm442_vm1, %v2912_v40  ;;  %2457 = vst.msk [vmem:[%s3233_s22 + $0x10] sm:$0xff] %vm442_vm1, %v2912_v40 }
 0x65d   : > { %2704 = vmatpush3.msra.mxu1 %v2459_v39  ;;  %2705 = vmatprep.mubr.msk.f32.mxu1 %vm3030_vm0, %v3031_v9 }
 0x65e   : > { %2822 = vmatprep.subr.bf16.mxu1 %v2821_v43 }
 0x72f   : > { %v1688_v50 = vpop.f32.mrb[16].mxu1 }
 0x730   : > { %v2702_v51 = vpop.f32.mrb[17].mxu1  ;;  %2706 = vmatmul.mubr.msk.f32.vlgmr.msra.gmra.mrb[18].mxu1 %vm601_vm3, %v1688_v50 }
 0x731   : > { %2824 = vmatpush3.bf16.msra.mxu1 %v2821_v43  ;;  %2723 = vmatprep.mubr.msk.f32.mxu1 %vm442_vm1, %v3166_v11 }
 0x732   : > { %2826 = vmatprep.subr.bf16.mxu1 %v2825_v55 }
 0x734   : > { %2724 = vmatmul.mubr.msk.f32.vlgmr.msra.gmra.mrb[20].mxu1 %vm442_vm1, %v3168_v12 }
 0x735   : > { %2730 = vmatprep.mubr.msk.f32.mxu1 %vm442_vm1, %v3166_v11  ;;  %2828 = vmatpush3.bf16.msra.mxu1 %v2825_v55 }
 0x736   : > { %2833 = vmatprep.subr.bf16.mxu1 %v3029_v4 }
 0x738   : > { %2731 = vmatmul.mubr.msk.f32.vlgmr.msra.gmra.mrb[22].mxu1 %vm442_vm1, %v3168_v12 }
 0x739   : > { %2744 = vmatprep.mubr.msk.f32.mxu1 %vm3030_vm0, %v3031_v9 }
 0x803   : > { %v1763_v11 = vpop.f32.mrb[18].mxu1 }
 0x804   : > { %v3377_v56 = vadd.f32 %v1763_v11, %v1298_v26  ;;  %v2707_v57 = vpop.f32.mrb[19].mxu1 }
 0x807   : > { %v2725_v58 = vpop.f32.mrb[20].mxu1 }
 0x808   : > { %v1912_v59 = vpop.f32.mrb[21].mxu1 }
 0x809   : > { %v2830_v60 = vpack.c.bf16 %v2725_v58, %v1912_v59 }
 0x80b   : > { %2832 = vmatpush3.bf16.xpose.msk.msra.mxu0 %vm3196_vm4, %v2830_v60  ;;  %v2732_v61 = vpop.f32.mrb[22].mxu1 }
 0x80c   : > { %v1990_v4 = vpop.f32.mrb[23].mxu1 }
 0x80d   : > { %v2834_v62 = vpack.c.bf16 %v2732_v61, %v1990_v4 }
 0x80f   : > { %2835 = vmatpush3.bf16.msra.mxu1 %v2834_v62 }
 0x810   : > { %2747 = vmatprep.subr.mxu1 %v3031_v9 }
 0x812   : > { %2738 = vmatmul.mubr.msk.f32.vlgmr.msra.gmra.mrb[18].mxu0 %vm601_vm3, %v1839_v52 }
 0x8e5   : > { %v2074_v12 = vpop.f32.mrb[18].mxu0 }
 0x8e6   : > { %v2075_v63 = vadd.f32 -2.7725887, %v2074_v12  ;;  %v2739_v0 = vpop.f32.mrb[19].mxu0 }
 0x8e8   : > { %v2477_v1 = vmul.f32 -1.442695, %v2075_v63 }
 0x8ea   : > { %2913 = vpow2.f32 %v2477_v1 }
 0x8f4   : > { %v2914_v2 = vpop.eup %2913 }
 0x8f5   : > { %v2081_v19 = vadd.f32 1.0, %v2914_v2 }
 0x8f7   : > { %2915 = vrcp.f32 %v2081_v19 }
 0x901   : > { %v2916_v5 = vpop.eup %2915 }
 0x902   : > { %2745 = vmatmul.mubr.msk.f32.vlgmr.msra.gmra.mrb[24].mxu1 %vm442_vm1, %v2916_v5  ;;  %2478 = vst.msk [vmem:[%s3233_s22 + $0x18] sm:$0xff] %vm442_vm1, %v2916_v5  ;;  %s2923_s22 = scalar_lea.vmem %s2922_s26, 1024 }
 0x903   : > { %2748 = vmatpush3.msra.mxu1 %v2480_v3  ;;  %2749 = vmatprep.mubr.msk.f32.mxu1 %vm3030_vm0, %v3031_v9  ;;  %p2925_p2 = scmp.lt.s32.totalorder %s2923_s22, %s2917_s23 }
 0x905   : > { %p2926_p3 = por %p2925_p2, %p2924_p1 }
 0x907   : > { %p2927_p5 = pnand %p2926_p3, %p2920_p0 }
 0x9d5   : > { %v2155_v6 = vpop.f32.mrb[24].mxu1 }
 0x9d6   : > { %v2746_v7 = vpop.f32.mrb[25].mxu1  ;;  %2750 = vmatmul.mubr.msk.f32.vlgmr.msra.gmra.mrb[26].mxu1 %vm601_vm3, %v2155_v6 }
 0x9d7   : > { %2930 = shalt.err (!%p2927_p5)
}
 0x9d8   : > { %s2931_s11 = scalar_lea.hbm %s3399_s20, 512  ;;  %s2935_s19 = scalar_lea.hbm %s3491_s8, 1024 }
 0x9d9   : > { %p2932_p6 = scmp.ne.s32.totalorder %s3399_s20, %s2931_s11  ;;  %p2936_p10 = scmp.lt.u32.totalorder %s3399_s20, %s3491_s8 }
 0x9da   : > { %p2937_p11 = scmp.lt.u32.totalorder %s2935_s19, %s2931_s11  ;;  %p2939_p13 = scmp.lt.u32.totalorder %s2931_s11, %s3399_s20 }
 0x9db   : > { %p2933_p7 = pnand %p2932_p6, %p3121_p4 }
 0x9dc   : > { %p2938_p12 = por %p2937_p11, %p2936_p10 }
 0x9dd   : > { %p2934_p9 = pneg %p2933_p7 }
 0x9de   : > { %p2940_p0 = por %p2939_p13, %p2938_p12 }
 0x9e0   : > { %p2941_p1 = pnand %p2940_p0, %p2934_p9 }
 0x9e2   : > { %2944 = shalt.err (!%p2941_p1)
}
 0x9e3   : > { %s3033_s23 = smov 128   ;;  %s3034_s22 = smov 8   ;;  %v2482_v8 = vld [vmem:[%s3489_s6] ss:$0 sm:$0xff] }
 0x9e4   : > { %2837 = dma.vmem_to_hbm [thread:$0]  (%p3121_p4), %s3394_s12, 512, %s3399_s20, %s2250_s21, %s3033_s23, %s3033_s23, %s3034_s22  }
 0x9e5   : > { %s2403_s14 = sshll.u32 %s3217_s24, 3  ;;  %s2485_s19 = sshll.u32 %s3019_s30, 7 }
 0x9e6   : > { %s339_s25 = scalar_lea.vmem [#allocation2], %s2403_s14  ;;  %s3434_s2 = scalar_lea.hbm %s3490_s7, %s2485_s19 }
 0x9e7   : > { %s2264_s26 = sshll.u32 %s339_s25, 4  ;;  %s2245_s12 = scalar_lea.sflag [#allocation3], %s3217_s24  ;;  %s3436_s26 = int_to_ptr.vmem [resolvable:$true] %s2264_s26 }
 0x9e8   : > { %s2945_s30 = scalar_lea.vmem %s3436_s26, 128  ;;  %s3035_s20 = smov [#allocation2]  }
 0x9e9   : > { %p2946_p2 = scmp.ne.s32.totalorder %s3436_s26, %s2945_s30  ;;  %s2949_s21 = sshll.u32 %s3035_s20, 4  ;;  %s2950_s21 = int_to_ptr.vmem [resolvable:$false] %s2949_s21 }
 0x9ea   : > { %s2951_s23 = scalar_lea.vmem %s2950_s21, 256  ;;  %p2952_p6 = scmp.lt.s32.totalorder %s3436_s26, %s2950_s21 }
 0x9eb   : > { %p2947_p3 = pnand %p2946_p2, %p3121_p4  ;;  %p2953_p7 = scmp.lt.s32.totalorder %s2951_s23, %s2945_s30 }
 0x9ed   : > { %p2948_p5 = pneg %p2947_p3  ;;  %p2954_p9 = por %p2953_p7, %p2952_p6 }
 0x9ef   : > { %p2955_p10 = pnand %p2954_p9, %p2948_p5 }
 0xaa9   : > { %v2230_v9 = vpop.f32.mrb[26].mxu1 }
 0xaaa   : > { %v2234_v10 = vadd.f32 %v2230_v9, %v3377_v56  ;;  %v2751_v14 = vpop.f32.mrb[27].mxu1 }
 0xaac   : > { %v2242_v15 = vadd.f32 %v2482_v8, %v2234_v10 }
 0xaae   : > { %2243 = vst.msk [vmem:[%s339_s25] sm:$0xff] %vm366_vm2, %v2242_v15 }
 0xaaf   : > { %2958 = shalt.err (!%p2955_p10)
}
 0xab0   : > { %s2959_s0 = scalar_lea.hbm %s3434_s2, 128  ;;  %s2963_s22 = scalar_lea.hbm %s3490_s7, 256 }
 0xab1   : > { %p2960_p11 = scmp.ne.s32.totalorder %s3434_s2, %s2959_s0  ;;  %p2964_p0 = scmp.lt.u32.totalorder %s3434_s2, %s3490_s7 }
 0xab2   : > { %p2965_p1 = scmp.lt.u32.totalorder %s2963_s22, %s2959_s0  ;;  %p2967_p3 = scmp.lt.u32.totalorder %s2959_s0, %s3434_s2 }
 0xab3   : > { %p2961_p12 = pnand %p2960_p11, %p3121_p4 }
 0xab4   : > { %p2966_p2 = por %p2965_p1, %p2964_p0 }
 0xab5   : > { %p2962_p13 = pneg %p2961_p12 }
 0xab6   : > { %p2968_p5 = por %p2967_p3, %p2966_p2 }
 0xab8   : > { %p2969_p6 = pnand %p2968_p5, %p2962_p13 }
 0xaba   : > { %2972 = shalt.err (!%p2969_p6)
}
 0xabb   : > { %2836 = dma.vmem_to_hbm [thread:$0]  (%p3121_p4), %s3436_s26, 128, %s3434_s2, %s2245_s12  }
 0xabc PF: > { %p2847_p7 = scmp.ge.s32.totalorder %s3027_s10, 2  ;;  %s2293_s11 = sand.u32 1, %s3007_s27  }
 0xabd   : > { %s2294_s19 = scalar_lea.sflag [#allocation3], %s2293_s11 }
 0xabe   : > { %p2841_p9 = pnand %p2847_p7, %p3128_p8 }
 0xac0   : > { %2998 = dma.done.wait (!%p2841_p9), %s2294_s19, 128  }
 0xac1   : > { %3000 = vsyncadd (!%p2841_p9), %s2294_s19, 4294967168  ;;  %s2303_s25 = scalar_lea.sflag [#allocation5], %s2293_s11 }
 0xac2   : > { %3002 = dma.done.wait (!%p2841_p9), %s2303_s25, 512  }
 0xac3   : > { %3004 = vsyncadd (!%p2841_p9), %s2303_s25, 4294966784  ;;  %s25_s10 = sadd.s32 1, %s3027_s10   ;;  %s3502_s27 = smov %s3011_s28 }
 0xac4   : > { %p22_p10 = scmp.ge.s32.totalorder %s25_s10, 4   ;;  %s3503_s28 = smov %s3015_s29 }
 0xac5   : > { %s3504_s29 = smov %s3134_s18  ;;  %s3505_s30 = smov %s3023_s9 }
 0xac6   : > { %s3506_s9 = smov %s3508_s13  ;;  %24 = sbr.rel (!%p22_p10) target bundleno = 10 (0xa), region = 118 }
 0xacd   :  { %2308 = vsyncpa [#allocation3], 1 }
 0xace   :  { %2310 = vsyncpa [#allocation3 + $0x1], 1 }
 0xacf   :  { %2311 = vsyncpa [#allocation5], 1 }
 0xad0   :  { %2313 = vsyncpa [#allocation5 + $0x1], 1 }

</bundles_post_ra>
